<compile_context>
chip_gen: v7x
topology: tpu7x:2x2x1
jax: 0.10.0
libtpu: 0.0.40
codegen_flags: <defaults>
</compile_context>

<pallas_src>
import functools

import numpy as np
import jax
import jax.numpy as jnp
from jax import lax
from jax.experimental import pallas as pl
from jax.experimental.pallas import tpu as pltpu


# ---------------------------------------------------------------------------
# Pallas kernel: dist = sqrt(max((q - mu) @ sigma_inv @ (q - mu)^T, 0))
# ---------------------------------------------------------------------------
def mahalanobis_kernel(q_ref, mu_ref, sinv_ref, out_ref, *, n_chunks, chunk):
    # q_ref: (TB, Fp) f32   mu_ref: (1, Fp) f32
    # sinv_ref: (Fp, Fp) bf16   out_ref: (1, TB) f32
    c = q_ref[...] - mu_ref[...]                      # (TB, Fp)  VPU, f32
    cb = c.astype(jnp.bfloat16)                       # MXU LHS in bf16
    tb_rows = c.shape[0]
    d2 = jnp.zeros((tb_rows,), jnp.float32)
    # Statically unrolled loop over lane-aligned column chunks of sigma_inv:
    # avoids materializing the full (TB, Fp) intermediate `t` for large Fp.
    for j in range(n_chunks):
        lo, hi = j * chunk, (j + 1) * chunk
        t = jnp.dot(cb, sinv_ref[:, lo:hi],           # (TB, chunk)  MXU, f32 acc
                    preferred_element_type=jnp.float32)
        d2 = d2 + jnp.sum(t * c[:, lo:hi], axis=-1)   # f32 VPU + lane reduce
    # clamp: fp cancellation near mu can push tiny d2 slightly negative
    out_ref[...] = jnp.sqrt(jnp.maximum(d2, 0.0))[None, :]   # lane-dense (1, TB)


# ---------------------------------------------------------------------------
# `_reduce`: AvgPool3d(2,2,2) cascade (fused into one pass when divisible)
# ---------------------------------------------------------------------------
def _avg_pool_2x2x2(v):
    """AvgPool3d(kernel=(2,2,2), stride=(2,2,2)) with PyTorch floor semantics."""
    B, C, D, H, W = v.shape
    v = v[:, :, : (D // 2) * 2, : (H // 2) * 2, : (W // 2) * 2]  # floor-crop odd tails
    return v.reshape(B, C, D // 2, 2, H // 2, 2, W // 2, 2).mean(axis=(3, 5, 7))


def _num_pool_levels(feat_shape):
    """Number of pool applications the module's `_reduce` performs."""
    c, d, h, w = feat_shape
    k = 0
    while float(c * d * h * w) > 10000.0:
        d, h, w = d // 2, h // 2, w // 2
        k += 1
    return k + 1  # trailing unconditional pool


def _reduce(x):
    """Module `_reduce`: pool while prod(shape[1:]) > 1e4, pool once more, flatten."""
    B, C, D, H, W = x.shape
    k = _num_pool_levels((C, D, H, W))
    s = 1 << k
    if D % s == 0 and H % s == 0 and W % s == 0:
        # Every cascade level divides evenly: fuse k read+write pooling passes
        # into a single reshape+mean (reads the volume from HBM exactly once).
        y = x.reshape(B, C, D // s, s, H // s, s, W // s, s).mean(axis=(3, 5, 7))
    else:
        # Odd intermediate dims somewhere: keep the exact floor-cropping cascade.
        y = x
        for _ in range(k):
            y = _avg_pool_2x2x2(y)
    return y.reshape(B, -1)                           # (B, F)


# ---------------------------------------------------------------------------
# Wrapper
# ---------------------------------------------------------------------------
def _vmem_cap_bytes():
    """Generation-gated scoped-VMEM ceiling (v5e/v6e 128 MiB/core, v7x 64 MiB/TC)."""
    try:
        cap = int(pltpu.get_tpu_info().vmem_capacity_bytes)
    except Exception:          # conservative fallback == v7x per-TensorCore VMEM
        cap = 64 << 20
    return max(cap // 2, 32 << 20)


def pooling_mahalanobis_forward(x, mu, sigma_inv):
    """Eval-mode forward: returns (x, batch_distances)."""
    B = x.shape[0]
    q = _reduce(x.astype(jnp.float32))                # (B, F) — pooling as plain XLA
    F = q.shape[1]

    # --- pad F to a lane-aligned multiple of 128 (exact: zero cols contribute 0)
    Fp = ((F + 127) // 128) * 128
    mu2 = mu.reshape(1, F).astype(jnp.float32)
    sinv = sigma_inv.reshape(F, F)
    if Fp != F:
        q = jnp.pad(q, ((0, 0), (0, Fp - F)))
        mu2 = jnp.pad(mu2, ((0, 0), (0, Fp - F)))
        sinv = jnp.pad(sinv, ((0, Fp - F), (0, Fp - F)))
    sinv_bf16 = sinv.astype(jnp.bfloat16)             # bf16 MXU operand, f32 accumulate

    # --- adaptive batch tile: small B avoids a padded 128-row tile; large B gets
    #     wider tiles where VMEM allows (v5e/v6e) to amortize grid-step overhead.
    cap = _vmem_cap_bytes()
    tb_cap = 512 if cap >= (48 << 20) else 256
    TB = min(tb_cap, ((B + 7) // 8) * 8)
    b_pad = ((B + TB - 1) // TB) * TB
    if b_pad != B:
        q = jnp.pad(q, ((0, b_pad - B), (0, 0)))

    # --- MXU column-chunking of sigma_inv (chunk always divides Fp)
    chunk = 256 if Fp % 256 == 0 else 128
    n_chunks = Fp // chunk

    # --- VMEM budget from layout-padded dims and actual buffer counts
    vmem_need = (2 * TB * Fp * 4                      # q tile, double-buffered f32
                 + 1 * 8 * Fp * 4                     # mu, single buffer (8-sublane pad)
                 + 1 * Fp * Fp * 2                    # sigma_inv, single buffer, bf16
                 + 2 * 8 * 128 * 4                    # output row blocks
                 + TB * Fp * (4 + 2)                  # in-kernel c (f32) + cb (bf16)
                 + TB * chunk * 4)                    # per-chunk t
    vmem_limit = int(min(max(vmem_need + (4 << 20), 32 << 20), cap))

    cost = pl.CostEstimate(
        flops=2 * b_pad * Fp * Fp + 3 * b_pad * Fp,
        transcendentals=b_pad,
        bytes_accessed=b_pad * Fp * 4 + Fp * Fp * 2 + Fp * 4 + b_pad * 4,
    )

    kernel = functools.partial(mahalanobis_kernel, n_chunks=n_chunks, chunk=chunk)

    dist_row = pl.pallas_call(
        kernel,
        out_shape=jax.ShapeDtypeStruct((1, b_pad), jnp.float32),
        grid_spec=pltpu.PrefetchScalarGridSpec(
            num_scalar_prefetch=0,
            grid=(b_pad // TB,),
            in_specs=[
                # batch tile of reduced features (streamed, double-buffered)
                pl.BlockSpec((TB, Fp), lambda i: (i, 0)),
                # mu: grid-resident, constant index_map -> single buffer
                pl.BlockSpec((1, Fp), lambda i: (0, 0),
                             pipeline_mode=pl.Buffered(1)),
                # sigma_inv: grid-resident, constant index_map -> single buffer
                pl.BlockSpec((Fp, Fp), lambda i: (0, 0),
                             pipeline_mode=pl.Buffered(1)),
            ],
            out_specs=pl.BlockSpec((1, TB), lambda i: (0, i)),
        ),
        compiler_params=pltpu.CompilerParams(
            dimension_semantics=("parallel",),        # batch tiles across TCs
            vmem_limit_bytes=vmem_limit,
        ),
        cost_estimate=cost,
    )(q, mu2, sinv_bf16)

    batch_distances = dist_row[0, :B]                 # .view(-1)
    return x, batch_distances                         # forward returns x unchanged


# ---------------------------------------------------------------------------
# Pure-JAX fp32 reference (independent code path)
# ---------------------------------------------------------------------------
def reference_forward(x, mu, sigma_inv):
    y = x.astype(jnp.float32)

    def pool(v):
        s = lax.reduce_window(v, 0.0, lax.add,
                              window_dimensions=(1, 1, 2, 2, 2),
                              window_strides=(1, 1, 2, 2, 2),
                              padding="VALID")
        return s / 8.0

    while float(np.prod(y.shape[1:])) > 10000.0:
        y = pool(y)
    y = pool(y)
    r = y.reshape(y.shape[0], -1)                     # (B, F)
    F = r.shape[1]
    c = r - mu.reshape(1, F)
    d = jnp.matmul(c, sigma_inv.reshape(F, F), precision=lax.Precision.HIGHEST)
    return jnp.sqrt(jnp.maximum(jnp.sum(d * c, axis=-1), 0.0))


if __name__ == "__main__":
    key = jax.random.PRNGKey(0)
    k_x, k_mu, k_a = jax.random.split(key, 3)

    # Small NCDHW input consistent with AvgPool3d in _reduce.
    B, C, D, H, W = 2, 4, 8, 8, 8
    x = jax.random.normal(k_x, (B, C, D, H, W), dtype=jnp.float32)

    # Deterministic synthetic "fitted" Gaussian parameters (fit()/LedoitWolf is
    # offline training machinery, not part of the forward hot path).
    F = _reduce(jnp.zeros((1, C, D, H, W), jnp.float32)).shape[1]   # 256
    mu = 0.1 * jax.random.normal(k_mu, (1, F), dtype=jnp.float32)
    A = jax.random.normal(k_a, (F, F), dtype=jnp.float32)
    sigma = A @ A.T / F + jnp.eye(F, dtype=jnp.float32)             # SPD covariance
    sigma_inv = jnp.linalg.inv(sigma).astype(jnp.float32)

    x_out, dists = pooling_mahalanobis_forward(x, mu, sigma_inv)
    dists = jax.block_until_ready(dists)

    ref = reference_forward(x, mu, sigma_inv)
    assert x_out.shape == x.shape and dists.shape == (B,)
    # bf16 MXU operands vs fp32 reference: validate at ~1-2% distance tolerance.
    assert jnp.allclose(dists, ref, rtol=2e-2, atol=2e-2), (dists, ref)
    print("KERNEL_OK")
</pallas_src>

<mosaic_0001>
module attributes {stable_mosaic.version = 11 : i64} {
  func.func @mahalanobis_kernel(%arg0: i32, %arg1: memref<8x256xf32, #tpu.memory_space<vmem>>, %arg2: memref<1x256xf32, #tpu.memory_space<vmem>>, %arg3: memref<256x256xbf16, #tpu.memory_space<vmem>>, %arg4: memref<1x8xf32, #tpu.memory_space<vmem>>) attributes {dimension_semantics = [#tpu.dimension_semantics<parallel>], iteration_bounds = array<i64: 1>, scalar_prefetch = 0 : i64, scratch_operands = 0 : i64, tpu.core_type = #tpu.core_type<tc>, window_params = [{transform_indices = @transform_0, window_bounds = array<i64: 8, 256>}, {pipeline_mode = #tpu.pipeline_mode<synchronous>, transform_indices = @transform_1, window_bounds = array<i64: 1, 256>}, {pipeline_mode = #tpu.pipeline_mode<synchronous>, transform_indices = @transform_2, window_bounds = array<i64: 256, 256>}, {transform_indices = @transform_3, window_bounds = array<i64: 1, 8>}]} {
    %c0 = arith.constant 0 : index
    %c0_0 = arith.constant 0 : index
    %0 = vector.load %arg1[%c0, %c0_0] : memref<8x256xf32, #tpu.memory_space<vmem>>, vector<8x256xf32>
    %c0_1 = arith.constant 0 : index
    %c0_2 = arith.constant 0 : index
    %1 = vector.load %arg2[%c0_1, %c0_2] : memref<1x256xf32, #tpu.memory_space<vmem>>, vector<1x256xf32>
    %2 = vector.broadcast %1 : vector<1x256xf32> to vector<8x256xf32>
    %3 = arith.subf %0, %2 : vector<8x256xf32>
    %4 = arith.truncf %3 : vector<8x256xf32> to vector<8x256xbf16>
    %cst = arith.constant 0.000000e+00 : f32
    %5 = vector.broadcast %cst : f32 to vector<8xf32>
    %c0_3 = arith.constant 0 : index
    %c0_4 = arith.constant 0 : index
    %6 = vector.load %arg3[%c0_3, %c0_4] : memref<256x256xbf16, #tpu.memory_space<vmem>>, vector<256x256xbf16>
    %cst_5 = arith.constant dense<0.000000e+00> : vector<8x256xf32>
    %7 = tpu.matmul %4, %6, %cst_5 {dimension_numbers = #tpu.dot_dimension_numbers<[1], [0], [0], [1], [0, 0, 1, 1], [], []>} : vector<8x256xbf16>, vector<256x256xbf16>, vector<8x256xf32> -> vector<8x256xf32>
    %8 = arith.mulf %7, %3 : vector<8x256xf32>
    %cst_6 = arith.constant dense<0.000000e+00> : vector<8xf32>
    %9 = vector.multi_reduction <add>, %8, %cst_6 [1] : vector<8x256xf32> to vector<8xf32>
    %10 = arith.addf %5, %9 : vector<8xf32>
    %cst_7 = arith.constant 0.000000e+00 : f32
    %11 = vector.broadcast %cst_7 : f32 to vector<8xf32>
    %12 = arith.maximumf %10, %11 : vector<8xf32>
    %13 = math.sqrt %12 : vector<8xf32>
    %14 = vector.shape_cast %13 : vector<8xf32> to vector<1x8xf32>
    %c0_8 = arith.constant 0 : index
    %c0_9 = arith.constant 0 : index
    %15 = vector.load %arg4[%c0_8, %c0_9] : memref<1x8xf32, #tpu.memory_space<vmem>>, vector<1x8xf32>
    tpu.vector_store %arg4[%c0_8, %c0_9], %14 {strides = array<i32>} : memref<1x8xf32, #tpu.memory_space<vmem>>, vector<1x8xf32>,
    return
  }
  func.func @transform_0(%arg0: i32) -> (i32, i32) {
    %c0_i32 = arith.constant 0 : i32
    %c0_i32_0 = arith.constant 0 : i32
    return %arg0, %c0_i32 : i32, i32
  }
  func.func @transform_1(%arg0: i32) -> (i32, i32) {
    %c0_i32 = arith.constant 0 : i32
    %c0_i32_0 = arith.constant 0 : i32
    %c0_i32_1 = arith.constant 0 : i32
    return %c0_i32, %c0_i32_0 : i32, i32
  }
  func.func @transform_2(%arg0: i32) -> (i32, i32) {
    %c0_i32 = arith.constant 0 : i32
    %c0_i32_0 = arith.constant 0 : i32
    %c0_i32_1 = arith.constant 0 : i32
    return %c0_i32, %c0_i32_0 : i32, i32
  }
  func.func @transform_3(%arg0: i32) -> (i32, i32) {
    %c0_i32 = arith.constant 0 : i32
    %c0_i32_0 = arith.constant 0 : i32
    return %c0_i32, %arg0 : i32, i32
  }
}

</mosaic_0001>

<bundles_post_ra>
// kernel: tpu_custom_call.1
= control target key start
LH: loop header
LB: loop body
LE: loop exit
PB: predicated region body
PF: predicated region fallthrough
CT: control target
= control target key end

     0   :  { %8 = vsyncpa [#allocation3], 0  ;;  %s569_s0 = inlined_call_operand.hbm [shape: f32[8,256], index: 0, kind: input, shape index: {}]   ;;  %s570_s1 = inlined_call_operand.vmem [shape: f32[1,256], index: 1, kind: input, shape index: {}]   ;;  %s571_s2 = inlined_call_operand.hbm [shape: bf16[256,256], index: 2, kind: input, shape index: {}]   ;;  %s572_s3 = inlined_call_operand.hbm [shape: f32[1,8], index: 3, kind: output, shape index: {}]  }
   0x1   :  { %9 = vsyncpa [#allocation6], 0 }
   0x2   :  { %10 = vsyncpa [#allocation4], 0  ;;  %s491_s12 = smov [#allocation2]   ;;  %s492_s14 = smov [#allocation5]  }
   0x3   :  { %s17_s13 = sshll.u32 %s491_s12, 4  ;;  %s28_s15 = sshll.u32 %s492_s14, 4  ;;  %s18_s13 = int_to_ptr.vmem [resolvable:$true] %s17_s13  ;;  %s516_s15 = int_to_ptr.vmem [resolvable:$true] %s28_s15 }
   0x4   :  { %s419_s18 = scalar_lea.hbm %s569_s0, 256 }
   0x5   :  { %p420_p0 = scmp.ne.s32.totalorder %s569_s0, %s419_s18  ;;  %p423_p1 = scmp.lt.u32.totalorder %s419_s18, %s569_s0 }
   0x7   :  { %p425_p2 = pnand %p423_p1, %p420_p0 }
   0x9   :  { %428 = shalt.err (!%p425_p2)
}
   0xa   :  { %s429_s23 = scalar_lea.vmem %s18_s13, 256  ;;  %p434_p4 = scmp.lt.s32.totalorder %s18_s13, %s18_s13 }
   0xb   :  { %p430_p3 = scmp.ne.s32.totalorder %s18_s13, %s429_s23  ;;  %p435_p5 = scmp.lt.s32.totalorder %s429_s23, %s429_s23 }
   0xd   :  { %p436_p6 = por %p435_p5, %p434_p4 }
   0xf   :  { %p437_p7 = pnand %p436_p6, %p430_p3 }
  0x11   :  { %440 = shalt.err (!%p437_p7)
}
  0x12   :  { %20 = dma.hbm_to_vmem [thread:$0]  %s569_s0, 256, %s18_s13, [#allocation3]  }
  0x13   :  { %s441_s28 = scalar_lea.hbm %s571_s2, 4096 }
  0x14   :  { %p442_p8 = scmp.ne.s32.totalorder %s571_s2, %s441_s28  ;;  %p445_p9 = scmp.lt.u32.totalorder %s441_s28, %s571_s2 }
  0x16   :  { %p447_p10 = pnand %p445_p9, %p442_p8 }
  0x18   :  { %450 = shalt.err (!%p447_p10)
}
  0x19   :  { %s451_s6 = scalar_lea.vmem %s516_s15, 4096  ;;  %p456_p12 = scmp.lt.s32.totalorder %s516_s15, %s516_s15 }
  0x1a   :  { %p452_p11 = scmp.ne.s32.totalorder %s516_s15, %s451_s6  ;;  %p457_p13 = scmp.lt.s32.totalorder %s451_s6, %s451_s6 }
  0x1c   :  { %p458_p0 = por %p457_p13, %p456_p12 }
  0x1e   :  { %p459_p1 = pnand %p458_p0, %p452_p11 }
  0x20   :  { %462 = shalt.err (!%p459_p1)
}
  0x21   :  { %s493_s0 = smov 128   ;;  %s494_s7 = smov 8  }
  0x22   :  { %34 = dma.hbm_to_vmem [thread:$0]  %s571_s2, 4096, %s516_s15, [#allocation6], %s493_s0, %s493_s0, %s494_s7  }
  0x23   :  { %485 = dma.done.wait [#allocation3], 256  }
  0x24   :  { %486 = vsyncadd [#allocation3], 4294967040 }
  0x25   :  { %487 = dma.done.wait [#allocation6], 4096  }
  0x26   :  { %488 = vsyncadd [#allocation6], 4294963200  ;;  %v369_v0 = vld [vmem:[#allocation5 + $0x4] ss:$8 sps:$4 sm:$0xff]   ;;  %v371_v1 = vld [vmem:[#allocation5] ss:$8 sps:$4 sm:$0xff]   ;;  %v45_v7 = vlaneseq }
  0x27   :  { %251 = vmatprep.subr.bf16.mxu0 %v369_v0  ;;  %v372_v2 = vld [vmem:[#allocation5 + $0x14] ss:$8 sps:$4 sm:$0xff]   ;;  %v374_v3 = vld [vmem:[#allocation5 + $0x10] ss:$8 sps:$4 sm:$0xff]   ;;  %v375_v4 = vld [vmem:[#allocation5 + $0x24] ss:$8 sps:$4 sm:$0xff]  }
  0x28   :  { %252 = vmatpush1.bf16.msra.mxu0 %v371_v1  ;;  %v377_v5 = vld [vmem:[#allocation5 + $0x20] ss:$8 sps:$4 sm:$0xff]   ;;  %v378_v6 = vld [vmem:[#allocation5 + $0x34] ss:$8 sps:$4 sm:$0xff]   ;;  %v380_v8 = vld [vmem:[#allocation5 + $0x30] ss:$8 sps:$4 sm:$0xff]  }
  0x29   :  { %253 = vmatprep.subr.bf16.mxu0 %v372_v2  ;;  %v381_v9 = vld [vmem:[#allocation5 + $0x44] ss:$8 sps:$4 sm:$0xff]   ;;  %v548_v10 = vshrl.u32 %v45_v7, 7  ;;  %v383_v11 = vld [vmem:[#allocation5 + $0x40] ss:$8 sps:$4 sm:$0xff]   ;;  %v42_v16 = vld [vmem:[#allocation2 + $0x8] sm:$0xff] }
  0x2a   :  { %v384_v12 = vld [vmem:[#allocation5 + $0x54] ss:$8 sps:$4 sm:$0xff]   ;;  %v386_v14 = vld [vmem:[#allocation5 + $0x50] ss:$8 sps:$4 sm:$0xff]   ;;  %v387_v15 = vld [vmem:[#allocation5 + $0x64] ss:$8 sps:$4 sm:$0xff]  }
  0x2b   :  { %v51_v13 = vsub.s32 1, %v548_v10  ;;  %v43_v17 = vld [vmem:[%s570_s1] sm:$0x3]  ;;  %v389_v19 = vld [vmem:[#allocation5 + $0x60] ss:$8 sps:$4 sm:$0xff]   ;;  %v47_v35 = vsub.s32 0, %v548_v10 }
  0x2c   :  { %254 = vmatpush1.bf16.msra.mxu0 %v374_v3  ;;  %v390_v20 = vld [vmem:[#allocation5 + $0x74] ss:$8 sps:$4 sm:$0xff]   ;;  %v392_v23 = vld [vmem:[#allocation5 + $0x70] ss:$8 sps:$4 sm:$0xff]   ;;  %v393_v24 = vld [vmem:[#allocation5 + $0x84] ss:$8 sps:$4 sm:$0xff]  }
  0x2d   :  { %255 = vmatprep.subr.bf16.mxu0 %v375_v4  ;;  %v52_v18 = vrot.slane %v43_v17, %v51_v13  ;;  %v395_v25 = vld [vmem:[#allocation5 + $0x80] ss:$8 sps:$4 sm:$0xff]   ;;  %v396_v26 = vld [vmem:[#allocation5 + $0x94] ss:$8 sps:$4 sm:$0xff]   ;;  %v398_v27 = vld [vmem:[#allocation5 + $0x90] ss:$8 sps:$4 sm:$0xff]   ;;  %v48_v38 = vrot.slane %v43_v17, %v47_v35 }
  0x2e   :  { %v399_v28 = vld [vmem:[#allocation5 + $0xa4] ss:$8 sps:$4 sm:$0xff]   ;;  %v401_v29 = vld [vmem:[#allocation5 + $0xa0] ss:$8 sps:$4 sm:$0xff]   ;;  %v402_v30 = vld [vmem:[#allocation5 + $0xb4] ss:$8 sps:$4 sm:$0xff]  }
  0x2f   :  { %v56_v21 = vsub.f32 %v42_v16, %v52_v18  ;;  %v404_v31 = vld [vmem:[#allocation5 + $0xb0] ss:$8 sps:$4 sm:$0xff]   ;;  %v405_v32 = vld [vmem:[#allocation5 + $0xc4] ss:$8 sps:$4 sm:$0xff]   ;;  %v407_v33 = vld [vmem:[#allocation5 + $0xc0] ss:$8 sps:$4 sm:$0xff]  }
  0x30   :  { %256 = vmatpush1.bf16.msra.mxu0 %v377_v5  ;;  %v408_v34 = vld [vmem:[#allocation5 + $0xd4] ss:$8 sps:$4 sm:$0xff]   ;;  %v410_v36 = vld [vmem:[#allocation5 + $0xd0] ss:$8 sps:$4 sm:$0xff]   ;;  %v411_v37 = vld [vmem:[#allocation5 + $0xe4] ss:$8 sps:$4 sm:$0xff]  }
  0x31   :  { %257 = vmatprep.subr.bf16.mxu0 %v378_v6  ;;  %v58_v22 = vpack.c.bf16 %v56_v21, %v56_v21  ;;  %v413_v39 = vld [vmem:[#allocation5 + $0xe0] ss:$8 sps:$4 sm:$0xff]   ;;  %v41_v40 = vld [vmem:[#allocation2] sm:$0xff]  ;;  %v308_v54 = vand.u32 127, %v45_v7  ;;  %s495_s1 = smov [#allocation7]   ;;  %vm314_vm2 = vcmask 57344  }
  0x32   :  { %v414_v41 = vld [vmem:[#allocation5 + $0xf4] ss:$8 sps:$4 sm:$0xff]   ;;  %v55_v42 = vsub.f32 %v41_v40, %v48_v38  ;;  %v416_v43 = vld [vmem:[#allocation5 + $0xf0] ss:$8 sps:$4 sm:$0xff]   ;;  %s322_s11 = sshll.u32 %s495_s1, 4  ;;  %s323_s11 = int_to_ptr.vmem [resolvable:$true] %s322_s11 }
  0x33   :  { %283 = vmatprep.mubr.bf16.mxu0 %v58_v22  ;;  %v311_v57 = vsub.s32 %v308_v54, %v548_v10  ;;  %s463_s12 = scalar_lea.vmem %s323_s11, 16  ;;  %s467_s13 = scalar_lea.vmem %s323_s11, 32 }
  0x34   :  { %258 = vmatpush1.bf16.msra.mxu0 %v380_v8  ;;  %v57_v44 = vpack.c.bf16 %v55_v42, %v55_v42  ;;  %p464_p2 = scmp.ne.s32.totalorder %s323_s11, %s463_s12  ;;  %p468_p3 = scmp.lt.s32.totalorder %s323_s11, %s323_s11 }
  0x35   :  { %259 = vmatprep.subr.bf16.mxu0 %v381_v9  ;;  %p469_p4 = scmp.lt.s32.totalorder %s467_s13, %s463_s12 }
  0x37   :  { %p470_p5 = por %p469_p4, %p468_p3 }
  0x38   :  { %260 = vmatpush1.bf16.msra.mxu0 %v383_v11 }
  0x39   :  { %261 = vmatprep.subr.bf16.mxu0 %v384_v12  ;;  %p471_p6 = pnand %p470_p5, %p464_p2 }
  0x3c   :  { %262 = vmatpush1.bf16.msra.mxu0 %v386_v14 }
  0x3d   :  { %263 = vmatprep.subr.bf16.mxu0 %v387_v15 }
  0x40   :  { %264 = vmatpush1.bf16.msra.mxu0 %v389_v19 }
  0x41   :  { %265 = vmatprep.subr.bf16.mxu0 %v390_v20 }
  0x44   :  { %266 = vmatpush1.bf16.msra.mxu0 %v392_v23 }
  0x45   :  { %267 = vmatprep.subr.bf16.mxu0 %v393_v24 }
  0x48   :  { %268 = vmatpush1.bf16.msra.mxu0 %v395_v25 }
  0x49   :  { %269 = vmatprep.subr.bf16.mxu0 %v396_v26 }
  0x4c   :  { %270 = vmatpush1.bf16.msra.mxu0 %v398_v27 }
  0x4d   :  { %271 = vmatprep.subr.bf16.mxu0 %v399_v28 }
  0x50   :  { %272 = vmatpush1.bf16.msra.mxu0 %v401_v29 }
  0x51   :  { %273 = vmatprep.subr.bf16.mxu0 %v402_v30 }
  0x54   :  { %274 = vmatpush1.bf16.msra.mxu0 %v404_v31 }
  0x55   :  { %275 = vmatprep.subr.bf16.mxu0 %v405_v32 }
  0x58   :  { %276 = vmatpush1.bf16.msra.mxu0 %v407_v33 }
  0x59   :  { %277 = vmatprep.subr.bf16.mxu0 %v408_v34 }
  0x5c   :  { %278 = vmatpush1.bf16.msra.mxu0 %v410_v36 }
  0x5d   :  { %279 = vmatprep.subr.bf16.mxu0 %v411_v37 }
  0x60   :  { %280 = vmatpush1.bf16.msra.mxu0 %v413_v39 }
  0x61   :  { %281 = vmatprep.subr.bf16.mxu0 %v414_v41 }
  0x64   :  { %282 = vmatpush1.bf16.msra.mxu0 %v416_v43 }
  0x67   :  { %284 = vmatmul.mubr.bf16.vlgmr.msra.gmra.mrb[0].mxu0 %v57_v44 }
 0x13a   :  { %v285_v45 = vpop.f32.mrb[0].mxu0 }
 0x13b   :  { %v292_v46 = vmul.f32 %v285_v45, %v55_v42  ;;  %v287_v47 = vpop.f32.mrb[1].mxu0 }
 0x13c   :  { %v293_v48 = vmul.f32 %v287_v47, %v56_v21  ;;  %v289_v49 = vpop.f32.mrb[2].mxu0 }
 0x13d   :  { %v290_v50 = vpop.f32.mrb[3].mxu0 }
 0x13e   :  { %v294_v51 = vadd.f32 %v293_v48, %v292_v46 }
 0x140   :  { %295 = vadd.xlane.f32.xlu0 %v294_v51 }
 0x1cd   :  { %v296_v52 = vpop.xlane.xlu0 %295 }
 0x1ce   :  { %v298_v53 = vmax.f32 %v296_v52, 0.0 }
 0x1d0   :  { %417 = vrsqrt.f32 %v298_v53  ;;  %vm301_vm0 = vcmp.eq.f32.partialorder %v298_v53, inf  ;;  %v304_v58 = vand.u32 2147483648, %v298_v53  ;;  %vm303_vm1 = vcmp.eq.f32.partialorder %v298_v53, 0.0 }
 0x1da   :  { %v418_v55 = vpop.eup %417 }
 0x1db   :  { %v300_v56 = vmul.f32 %v418_v55, %v298_v53 }
 0x1dd   :  { %v302_v59 = vsel %vm301_vm0, %v298_v53, %v300_v56 }
 0x1de   :  { %v305_v60 = vsel %vm303_vm1, %v304_v58, %v302_v59 }
 0x1df   :  { %v312_v61 = vrot.slane %v305_v60, %v311_v57 }
 0x1e1   :  { %315 = vst.msk [vmem:[#allocation7] sm:$0x1] %vm314_vm2, %v312_v61 }
 0x1e2   :  { %474 = shalt.err (!%p471_p6)
}
 0x1e3   :  { %s475_s16 = scalar_lea.hbm %s572_s3, 16 }
 0x1e4   :  { %p476_p7 = scmp.ne.s32.totalorder %s572_s3, %s475_s16  ;;  %p479_p8 = scmp.lt.u32.totalorder %s475_s16, %s572_s3 }
 0x1e6   :  { %p481_p9 = pnand %p479_p8, %p476_p7 }
 0x1e8   :  { %484 = shalt.err (!%p481_p9)
}
 0x1e9   :  { %325 = dma.vmem_to_hbm [thread:$0]  %s323_s11, 16, %s572_s3, [#allocation4]  }
 0x1ea   :  { %489 = dma.done.wait [#allocation4], 16  }
 0x1eb   :  { %490 = vsyncadd [#allocation4], 4294967280 }
 0x1ec   :  { %329 = vsyncpa [#allocation3], 1 }
 0x1ed   :  { %330 = vsyncpa [#allocation6], 1 }
 0x1ee   :  { %331 = vsyncpa [#allocation4], 1 }

</bundles_post_ra>
